<compile_context>
chip_gen: v7x
topology: tpu7x:2x2x1
jax: 0.10.0
libtpu: 0.0.40
codegen_flags: <defaults>
</compile_context>

<pallas_src>
import functools
import math

import jax
import jax.numpy as jnp
from jax import lax
from jax.experimental import pallas as pl
from jax.experimental.pallas import tpu as pltpu


# murmur3-style 32-bit mixing constants, expressed as signed int32 values so all
# arithmetic stays in (wrapping) int32 — lowers on Mosaic TPU and in interpret mode.
_C_ROW   = -1640531535   # 0x9E3779B1
_C_COL   = -2048144777   # 0x85EBCA77
_C_BATCH = 668265295     # 0x27D4EB2F
_C_MUL1  = -2048144789   # 0x85EBCA6B
_C_MUL2  = -1028477387   # 0xC2B2AE35


def _mix32(h):
    # murmur3 finalizer; logical right shift emulated as arithmetic shift + mask.
    h = h ^ ((h >> 16) & 0xFFFF)
    h = h * _C_MUL1
    h = h ^ ((h >> 13) & 0x7FFFF)
    h = h * _C_MUL2
    h = h ^ ((h >> 16) & 0xFFFF)
    return h


def _sdpa_dropout_kernel(seed_ref, q_ref, kv_ref, o_ref,
                         m_sc, l_sc, acc_sc, *, p_drop, scale, tl, ts):
    b_idx = pl.program_id(0)
    l_idx = pl.program_id(1)
    s_idx = pl.program_id(2)
    n_s = pl.num_programs(2)

    @pl.when(s_idx == 0)
    def _init():
        m_sc[...] = jnp.full(m_sc.shape, -jnp.inf, dtype=jnp.float32)
        l_sc[...] = jnp.zeros(l_sc.shape, dtype=jnp.float32)
        acc_sc[...] = jnp.zeros(acc_sc.shape, dtype=jnp.float32)

    kv = kv_ref[0]                     # (ts, D) -- used as both K and V (one DMA)
    q = q_ref[0] * scale               # fold sqrt(D) logit scale into q: O(tl*D)

    # logits tile (tl, ts) = q_scaled @ kv^T, f32 accumulation on the MXU
    s = lax.dot_general(
        q, kv,
        dimension_numbers=(((1,), (1,)), ((), ())),
        preferred_element_type=jnp.float32,
    )

    # online softmax update
    m_prev = m_sc[...]                                            # (tl, 1)
    m_new = jnp.maximum(m_prev, jnp.max(s, axis=-1, keepdims=True))
    alpha = jnp.exp(m_prev - m_new)                               # (tl, 1)
    p = jnp.exp(s - m_new)                                        # (tl, ts)

    # denominator uses the *un-dropped* probabilities (dropout is applied after
    # softmax in the reference; the per-row 1/l commutes with the mask).
    l_sc[...] = alpha * l_sc[...] + jnp.sum(p, axis=-1, keepdims=True)
    m_sc[...] = m_new

    if p_drop > 0.0:
        # counter-based hash -> keep mask (keep prob 1-p), fused with 1/(1-p) scale
        row = lax.broadcasted_iota(jnp.int32, (tl, ts), 0) + l_idx * tl
        col = lax.broadcasted_iota(jnp.int32, (tl, ts), 1) + s_idx * ts
        key = seed_ref[0] + b_idx * _C_BATCH
        h = _mix32((row * _C_ROW) ^ (col * _C_COL) ^ key)
        u = h & 0x7FFFFFFF                                 # uniform in [0, 2^31)
        thresh = int(p_drop * 2147483648.0)                # p * 2^31
        keep = (u >= thresh).astype(jnp.float32) * (1.0 / (1.0 - p_drop))
        p = p * keep

    # acc update: (dropped p) @ V, reusing the same kv tile
    acc_sc[...] = alpha * acc_sc[...] + lax.dot_general(
        p.astype(kv.dtype), kv,
        dimension_numbers=(((1,), (0,)), ((), ())),
        preferred_element_type=jnp.float32,
    )

    @pl.when(s_idx == n_s - 1)
    def _finalize():
        o_ref[0] = (acc_sc[...] / l_sc[...]).astype(o_ref.dtype)


def _pick_tile(dim, cap, aligns=(128, 8)):
    """Largest aligned divisor of `dim` that is <= cap; full dim if none / small."""
    if dim <= cap:
        return dim
    for align in aligns:
        t = (cap // align) * align
        while t >= align:
            if dim % t == 0:
                return t
            t -= align
    return dim


def sdpa_dropout(x1, x2, seed, p_drop=0.1, tl_max=256, ts_max=512):
    B, L, D = x1.shape
    B2, S, D2 = x2.shape
    if B != B2 or D != D2:
        raise ValueError("x2 must be (B, S, D) with B, D matching x1")
    if not (0.0 <= p_drop < 1.0):
        raise ValueError("p_drop must be in [0, 1)")

    tl = _pick_tile(L, tl_max)
    ts = _pick_tile(S, ts_max)
    grid = (B, L // tl, S // ts)

    kernel = functools.partial(
        _sdpa_dropout_kernel,
        p_drop=float(p_drop),
        scale=math.sqrt(D),   # ref: qk.div(1/sqrt(D)) == qk * sqrt(D)
        tl=tl, ts=ts,
    )

    itemsize = jnp.dtype(x1.dtype).itemsize
    cost = pl.CostEstimate(
        flops=4 * B * L * S * D,              # QK^T + PV matmuls
        transcendentals=B * L * S,            # exp
        bytes_accessed=itemsize * (2 * B * L * D + B * S * D),
    )

    grid_spec = pltpu.PrefetchScalarGridSpec(
        num_scalar_prefetch=1,                # dropout seed lives in SMEM
        grid=grid,
        in_specs=[
            pl.BlockSpec((1, tl, D), lambda b, l, s, seed_ref: (b, l, 0)),
            pl.BlockSpec((1, ts, D), lambda b, l, s, seed_ref: (b, s, 0)),
        ],
        out_specs=pl.BlockSpec((1, tl, D), lambda b, l, s, seed_ref: (b, l, 0)),
        scratch_shapes=[
            pltpu.VMEM((tl, 1), jnp.float32),   # running max  m
            pltpu.VMEM((tl, 1), jnp.float32),   # running sum  l
            pltpu.VMEM((tl, D), jnp.float32),   # output accumulator
        ],
    )

    return pl.pallas_call(
        kernel,
        out_shape=jax.ShapeDtypeStruct((B, L, D), x1.dtype),
        grid_spec=grid_spec,
        compiler_params=pltpu.CompilerParams(
            dimension_semantics=("parallel", "parallel", "arbitrary"),
            vmem_limit_bytes=48 * 1024 * 1024,   # fits v7x's 64 MiB with headroom
        ),
        cost_estimate=cost,
    )(jnp.asarray([seed], dtype=jnp.int32), x1, x2)


if __name__ == "__main__":
    key = jax.random.PRNGKey(0)
    k1, k2 = jax.random.split(key)

    # Forward contract: x1: (B, L, D), x2: (B, S, D) -> output: (B, L, D)
    B, L, S, D = 2, 8, 8, 16
    x1 = jax.random.uniform(k1, (B, L, D), dtype=jnp.float32)   # ~ torch.rand
    x2 = jax.random.normal(k2, (B, S, D), dtype=jnp.float32)    # ~ torch.randn

    out = sdpa_dropout(x1, x2, seed=1234, p_drop=0.1)
    jax.block_until_ready(out)

    assert out.shape == (B, L, D)
    assert out.dtype == jnp.float32
    assert bool(jnp.all(jnp.isfinite(out)))
    print("KERNEL_OK")
</pallas_src>

<mosaic_0001>
module attributes {stable_mosaic.version = 11 : i64} {
  func.func @_sdpa_dropout_kernel(%arg0: i32, %arg1: i32, %arg2: i32, %arg3: memref<1xi32, #tpu.memory_space<smem>>, %arg4: memref<1x8x16xf32, #tpu.memory_space<vmem>>, %arg5: memref<1x8x16xf32, #tpu.memory_space<vmem>>, %arg6: memref<1x8x16xf32, #tpu.memory_space<vmem>>, %arg7: memref<8x1xf32, #tpu.memory_space<vmem>>, %arg8: memref<8x1xf32, #tpu.memory_space<vmem>>, %arg9: memref<8x16xf32, #tpu.memory_space<vmem>>) attributes {dimension_semantics = [#tpu.dimension_semantics<parallel>, #tpu.dimension_semantics<parallel>, #tpu.dimension_semantics<arbitrary>], iteration_bounds = array<i64: 2, 1, 1>, scalar_prefetch = 1 : i64, scratch_operands = 3 : i64, tpu.core_type = #tpu.core_type<tc>, window_params = [{transform_indices = @transform_0, window_bounds = array<i64: 1, 8, 16>}, {transform_indices = @transform_1, window_bounds = array<i64: 1, 8, 16>}, {transform_indices = @transform_2, window_bounds = array<i64: 1, 8, 16>}]} {
    %c0_i32 = arith.constant 0 : i32
    %0 = arith.cmpi eq, %arg2, %c0_i32 : i32
    %1 = arith.extui %0 : i1 to i32
    %c0_i32_0 = arith.constant 0 : i32
    %2 = arith.cmpi ne, %1, %c0_i32_0 : i32
    scf.if %2 {
      %cst_29 = arith.constant 0xFF800000 : f32
      %81 = vector.broadcast %cst_29 : f32 to vector<8x1xf32>
      %c0_30 = arith.constant 0 : index
      %c0_31 = arith.constant 0 : index
      %82 = vector.load %arg7[%c0_30, %c0_31] : memref<8x1xf32, #tpu.memory_space<vmem>>, vector<8x1xf32>
      tpu.vector_store %arg7[%c0_30, %c0_31], %81 {strides = array<i32>} : memref<8x1xf32, #tpu.memory_space<vmem>>, vector<8x1xf32>,
      %cst_32 = arith.constant 0.000000e+00 : f32
      %83 = vector.broadcast %cst_32 : f32 to vector<8x1xf32>
      %c0_33 = arith.constant 0 : index
      %c0_34 = arith.constant 0 : index
      %84 = vector.load %arg8[%c0_33, %c0_34] : memref<8x1xf32, #tpu.memory_space<vmem>>, vector<8x1xf32>
      tpu.vector_store %arg8[%c0_33, %c0_34], %83 {strides = array<i32>} : memref<8x1xf32, #tpu.memory_space<vmem>>, vector<8x1xf32>,
      %cst_35 = arith.constant 0.000000e+00 : f32
      %85 = vector.broadcast %cst_35 : f32 to vector<8x16xf32>
      %c0_36 = arith.constant 0 : index
      %c0_37 = arith.constant 0 : index
      %86 = vector.load %arg9[%c0_36, %c0_37] : memref<8x16xf32, #tpu.memory_space<vmem>>, vector<8x16xf32>
      tpu.vector_store %arg9[%c0_36, %c0_37], %85 {strides = array<i32>} : memref<8x16xf32, #tpu.memory_space<vmem>>, vector<8x16xf32>,
    } else {
    }
    %c0 = arith.constant 0 : index
    %c0_1 = arith.constant 0 : index
    %c0_2 = arith.constant 0 : index
    %3 = vector.load %arg5[%c0, %c0_1, %c0_2] : memref<1x8x16xf32, #tpu.memory_space<vmem>>, vector<1x8x16xf32>
    %4 = vector.shape_cast %3 : vector<1x8x16xf32> to vector<8x16xf32>
    %c0_3 = arith.constant 0 : index
    %c0_4 = arith.constant 0 : index
    %c0_5 = arith.constant 0 : index
    %5 = vector.load %arg4[%c0_3, %c0_4, %c0_5] : memref<1x8x16xf32, #tpu.memory_space<vmem>>, vector<1x8x16xf32>
    %6 = vector.shape_cast %5 : vector<1x8x16xf32> to vector<8x16xf32>
    %cst = arith.constant 4.000000e+00 : f32
    %7 = vector.broadcast %cst : f32 to vector<8x16xf32>
    %8 = arith.mulf %6, %7 : vector<8x16xf32>
    %cst_6 = arith.constant dense<0.000000e+00> : vector<8x8xf32>
    %9 = tpu.matmul %8, %4, %cst_6 {dimension_numbers = #tpu.dot_dimension_numbers<[1], [1], [0], [0], [0, 0, 1, 0], [], []>} : vector<8x16xf32>, vector<8x16xf32>, vector<8x8xf32> -> vector<8x8xf32>
    %c0_7 = arith.constant 0 : index
    %c0_8 = arith.constant 0 : index
    %10 = vector.load %arg7[%c0_7, %c0_8] : memref<8x1xf32, #tpu.memory_space<vmem>>, vector<8x1xf32>
    %cst_9 = arith.constant dense<0xFF800000> : vector<8xf32>
    %11 = vector.multi_reduction <maximumf>, %9, %cst_9 [1] : vector<8x8xf32> to vector<8xf32>
    %12 = vector.shape_cast %11 : vector<8xf32> to vector<8x1xf32>
    %13 = arith.maximumf %10, %12 : vector<8x1xf32>
    %14 = arith.subf %10, %13 : vector<8x1xf32>
    %15 = math.exp %14 : vector<8x1xf32>
    %16 = vector.broadcast %13 : vector<8x1xf32> to vector<8x8xf32>
    %17 = arith.subf %9, %16 : vector<8x8xf32>
    %18 = math.exp %17 : vector<8x8xf32>
    %c0_10 = arith.constant 0 : index
    %c0_11 = arith.constant 0 : index
    %19 = vector.load %arg8[%c0_10, %c0_11] : memref<8x1xf32, #tpu.memory_space<vmem>>, vector<8x1xf32>
    %20 = arith.mulf %15, %19 : vector<8x1xf32>
    %cst_12 = arith.constant dense<0.000000e+00> : vector<8xf32>
    %21 = vector.multi_reduction <add>, %18, %cst_12 [1] : vector<8x8xf32> to vector<8xf32>
    %22 = vector.shape_cast %21 : vector<8xf32> to vector<8x1xf32>
    %23 = arith.addf %20, %22 : vector<8x1xf32>
    %c0_13 = arith.constant 0 : index
    %c0_14 = arith.constant 0 : index
    %24 = vector.load %arg8[%c0_13, %c0_14] : memref<8x1xf32, #tpu.memory_space<vmem>>, vector<8x1xf32>
    tpu.vector_store %arg8[%c0_13, %c0_14], %23 {strides = array<i32>} : memref<8x1xf32, #tpu.memory_space<vmem>>, vector<8x1xf32>,
    %c0_15 = arith.constant 0 : index
    %c0_16 = arith.constant 0 : index
    %25 = vector.load %arg7[%c0_15, %c0_16] : memref<8x1xf32, #tpu.memory_space<vmem>>, vector<8x1xf32>
    tpu.vector_store %arg7[%c0_15, %c0_16], %13 {strides = array<i32>} : memref<8x1xf32, #tpu.memory_space<vmem>>, vector<8x1xf32>,
    %26 = tpu.iota {dimensions = array<i32: 0>} : vector<8x8xi32>
    %c8_i32 = arith.constant 8 : i32
    %27 = arith.muli %arg1, %c8_i32 : i32
    %28 = vector.broadcast %27 : i32 to vector<8x8xi32>
    %29 = arith.addi %26, %28 : vector<8x8xi32>
    %30 = tpu.iota {dimensions = array<i32: 1>} : vector<8x8xi32>
    %c8_i32_17 = arith.constant 8 : i32
    %31 = arith.muli %arg2, %c8_i32_17 : i32
    %32 = vector.broadcast %31 : i32 to vector<8x8xi32>
    %33 = arith.addi %30, %32 : vector<8x8xi32>
    %c0_18 = arith.constant 0 : index
    %34 = memref.load %arg3[%c0_18] : memref<1xi32, #tpu.memory_space<smem>>
    %c668265295_i32 = arith.constant 668265295 : i32
    %35 = arith.muli %arg0, %c668265295_i32 : i32
    %36 = arith.addi %34, %35 : i32
    %c-1640531535_i32 = arith.constant -1640531535 : i32
    %37 = vector.broadcast %c-1640531535_i32 : i32 to vector<8x8xi32>
    %38 = arith.muli %29, %37 : vector<8x8xi32>
    %c-2048144777_i32 = arith.constant -2048144777 : i32
    %39 = vector.broadcast %c-2048144777_i32 : i32 to vector<8x8xi32>
    %40 = arith.muli %33, %39 : vector<8x8xi32>
    %41 = arith.xori %38, %40 : vector<8x8xi32>
    %42 = vector.broadcast %36 : i32 to vector<8x8xi32>
    %43 = arith.xori %41, %42 : vector<8x8xi32>
    %c16_i32 = arith.constant 16 : i32
    %44 = vector.broadcast %c16_i32 : i32 to vector<8x8xi32>
    %45 = arith.shrsi %43, %44 : vector<8x8xi32>
    %c65535_i32 = arith.constant 65535 : i32
    %46 = vector.broadcast %c65535_i32 : i32 to vector<8x8xi32>
    %47 = arith.andi %45, %46 : vector<8x8xi32>
    %48 = arith.xori %43, %47 : vector<8x8xi32>
    %c-2048144789_i32 = arith.constant -2048144789 : i32
    %49 = vector.broadcast %c-2048144789_i32 : i32 to vector<8x8xi32>
    %50 = arith.muli %48, %49 : vector<8x8xi32>
    %c13_i32 = arith.constant 13 : i32
    %51 = vector.broadcast %c13_i32 : i32 to vector<8x8xi32>
    %52 = arith.shrsi %50, %51 : vector<8x8xi32>
    %c524287_i32 = arith.constant 524287 : i32
    %53 = vector.broadcast %c524287_i32 : i32 to vector<8x8xi32>
    %54 = arith.andi %52, %53 : vector<8x8xi32>
    %55 = arith.xori %50, %54 : vector<8x8xi32>
    %c-1028477387_i32 = arith.constant -1028477387 : i32
    %56 = vector.broadcast %c-1028477387_i32 : i32 to vector<8x8xi32>
    %57 = arith.muli %55, %56 : vector<8x8xi32>
    %c16_i32_19 = arith.constant 16 : i32
    %58 = vector.broadcast %c16_i32_19 : i32 to vector<8x8xi32>
    %59 = arith.shrsi %57, %58 : vector<8x8xi32>
    %c65535_i32_20 = arith.constant 65535 : i32
    %60 = vector.broadcast %c65535_i32_20 : i32 to vector<8x8xi32>
    %61 = arith.andi %59, %60 : vector<8x8xi32>
    %62 = arith.xori %57, %61 : vector<8x8xi32>
    %c2147483647_i32 = arith.constant 2147483647 : i32
    %63 = vector.broadcast %c2147483647_i32 : i32 to vector<8x8xi32>
    %64 = arith.andi %62, %63 : vector<8x8xi32>
    %c214748364_i32 = arith.constant 214748364 : i32
    %65 = vector.broadcast %c214748364_i32 : i32 to vector<8x8xi32>
    %66 = arith.cmpi sge, %64, %65 : vector<8x8xi32>
    %67 = arith.extui %66 : vector<8x8xi1> to vector<8x8xi32>
    %68 = arith.sitofp %67 : vector<8x8xi32> to vector<8x8xf32>
    %cst_21 = arith.constant 1.11111116 : f32
    %69 = vector.broadcast %cst_21 : f32 to vector<8x8xf32>
    %70 = arith.mulf %68, %69 : vector<8x8xf32>
    %71 = arith.mulf %18, %70 : vector<8x8xf32>
    %c0_22 = arith.constant 0 : index
    %c0_23 = arith.constant 0 : index
    %72 = vector.load %arg9[%c0_22, %c0_23] : memref<8x16xf32, #tpu.memory_space<vmem>>, vector<8x16xf32>
    %73 = vector.broadcast %15 : vector<8x1xf32> to vector<8x16xf32>
    %74 = arith.mulf %73, %72 : vector<8x16xf32>
    %cst_24 = arith.constant dense<0.000000e+00> : vector<8x16xf32>
    %75 = tpu.matmul %71, %4, %cst_24 {dimension_numbers = #tpu.dot_dimension_numbers<[1], [0], [0], [1], [0, 0, 1, 1], [], []>} : vector<8x8xf32>, vector<8x16xf32>, vector<8x16xf32> -> vector<8x16xf32>
    %76 = arith.addf %74, %75 : vector<8x16xf32>
    %c0_25 = arith.constant 0 : index
    %c0_26 = arith.constant 0 : index
    %77 = vector.load %arg9[%c0_25, %c0_26] : memref<8x16xf32, #tpu.memory_space<vmem>>, vector<8x16xf32>
    tpu.vector_store %arg9[%c0_25, %c0_26], %76 {strides = array<i32>} : memref<8x16xf32, #tpu.memory_space<vmem>>, vector<8x16xf32>,
    %c0_i32_27 = arith.constant 0 : i32
    %78 = arith.cmpi eq, %arg2, %c0_i32_27 : i32
    %79 = arith.extui %78 : i1 to i32
    %c0_i32_28 = arith.constant 0 : i32
    %80 = arith.cmpi ne, %79, %c0_i32_28 : i32
    scf.if %80 {
      %c0_29 = arith.constant 0 : index
      %c0_30 = arith.constant 0 : index
      %81 = vector.load %arg9[%c0_29, %c0_30] : memref<8x16xf32, #tpu.memory_space<vmem>>, vector<8x16xf32>
      %c0_31 = arith.constant 0 : index
      %c0_32 = arith.constant 0 : index
      %82 = vector.load %arg8[%c0_31, %c0_32] : memref<8x1xf32, #tpu.memory_space<vmem>>, vector<8x1xf32>
      %83 = vector.broadcast %82 : vector<8x1xf32> to vector<8x16xf32>
      %84 = arith.divf %81, %83 : vector<8x16xf32>
      %c0_33 = arith.constant 0 : index
      %c0_34 = arith.constant 0 : index
      %c0_35 = arith.constant 0 : index
      %85 = vector.load %arg6[%c0_33, %c0_34, %c0_35] : memref<1x8x16xf32, #tpu.memory_space<vmem>>, vector<1x8x16xf32>
      %86 = vector.shape_cast %85 : vector<1x8x16xf32> to vector<8x16xf32>
      %87 = vector.shape_cast %84 : vector<8x16xf32> to vector<1x8x16xf32>
      tpu.vector_store %arg6[%c0_33, %c0_34, %c0_35], %87 {strides = array<i32>} : memref<1x8x16xf32, #tpu.memory_space<vmem>>, vector<1x8x16xf32>,
    } else {
    }
    return
  }
  func.func @transform_0(%arg0: i32, %arg1: i32, %arg2: i32, %arg3: memref<1xi32, #tpu.memory_space<smem>>) -> (i32, i32, i32) {
    %c0_i32 = arith.constant 0 : i32
    %c0_i32_0 = arith.constant 0 : i32
    return %arg0, %arg1, %c0_i32 : i32, i32, i32
  }
  func.func @transform_1(%arg0: i32, %arg1: i32, %arg2: i32, %arg3: memref<1xi32, #tpu.memory_space<smem>>) -> (i32, i32, i32) {
    %c0_i32 = arith.constant 0 : i32
    %c0_i32_0 = arith.constant 0 : i32
    return %arg0, %arg2, %c0_i32 : i32, i32, i32
  }
  func.func @transform_2(%arg0: i32, %arg1: i32, %arg2: i32, %arg3: memref<1xi32, #tpu.memory_space<smem>>) -> (i32, i32, i32) {
    %c0_i32 = arith.constant 0 : i32
    %c0_i32_0 = arith.constant 0 : i32
    return %arg0, %arg1, %c0_i32 : i32, i32, i32
  }
}

</mosaic_0001>

<bundles_post_ra>
// kernel: tpu_custom_call.1
= control target key start
LH: loop header
LB: loop body
LE: loop exit
PB: predicated region body
PF: predicated region fallthrough
CT: control target
= control target key end

     0   :  { %s1124_s0 = inlined_call_operand.<no memory space> [shape: s32[1], index: 0, kind: input, shape index: {}]   ;;  %s1125_s1 = inlined_call_operand.hbm [shape: f32[2,8,16], index: 1, kind: input, shape index: {}]   ;;  %s1126_s2 = inlined_call_operand.hbm [shape: f32[2,8,16], index: 2, kind: input, shape index: {}]   ;;  %s1127_s3 = inlined_call_operand.hbm [shape: f32[2,8,16], index: 3, kind: output, shape index: {}]  }
   0x1   :  { %8 = sst [smem:[#allocation6]] %s1124_s0 }
   0x2   :  { %9 = vsyncpa [#allocation8], 0 }
   0x3   :  { %11 = vsyncpa [#allocation8 + $0x1], 0 }
   0x4   :  { %12 = vsyncpa [#allocation11], 0 }
   0x5   :  { %14 = vsyncpa [#allocation11 + $0x1], 0 }
   0x6   :  { %15 = vsyncpa [#allocation9], 0 }
   0x7   :  { %17 = vsyncpa [#allocation9 + $0x1], 0  ;;  %s886_s14 = smov 0   ;;  %s888_s15 = smov 0  }
   0x8   :  { %s890_s16 = smov 0   ;;  %s892_s17 = smov 0  }
   0x9   :  { %s894_s18 = smov 0   ;;  %s896_s19 = smov 0  }
   0xa LB: > { %s592_s0 = sadd.s32 4294967295, %s854_s19   ;;  %s593_s20 = sadd.s32 4294967294, %s854_s19   ;;  %s854_s19 = sphi %s896_s19, %s23_s19   ;;  %s850_s18 = sphi %s894_s18, %s1147_s18   ;;  %s846_s17 = sphi %s892_s17, %s1146_s17   ;;  %s842_s16 = sphi %s890_s16, %s1145_s16   ;;  %s838_s15 = sphi %s888_s15, %s1144_s15   ;;  %s834_s14 = sphi %s886_s14, %s1143_s14  }
   0xb   : > { %s42_s21 = sadd.s32 1, %s850_s18  ;;  %s51_s22 = sadd.s32 1, %s842_s16 }
   0xc   : > { %p44_p0 = scmp.ge.s32.totalorder %s42_s21, 2  ;;  %p58_p1 = scmp.ne.s32.totalorder %s842_s16, %s838_s15 }
   0xd   : > { %p59_p2 = scmp.eq.s32.totalorder %s854_s19, 0  ;;  %p64_p3 = scmp.ne.s32.totalorder %s838_s15, %s834_s14 }
   0xe   : > { %s1149_s21 = smov (%p44_p0, %s42_s21), 0  ;;  %p65_p5 = scmp.eq.s32.totalorder %s592_s0, 0 }
   0xf   : > { %p927_p4 = por %p59_p2, %p58_p1  ;;  %s46_s24 = ssub.s32 %s850_s18, %s1149_s21 }
  0x10   : > { %p118_p6 = scmp.eq.s32.totalorder %s592_s0, 1  ;;  %p49_p7 = scmp.eq.s32.totalorder %s46_s24, 0 }
  0x11   : > { %p933_p8 = por %p65_p5, %p64_p3  ;;  %p124_p10 = scmp.eq.s32.totalorder %s593_s20, 1 }
  0x12   : > { %p937_p9 = por %p118_p6, %p58_p1  ;;  %p646_p13 = scmp.lt.s32.totalorder %s854_s19, 2 }
  0x13   : > { %s1131_s25 = scalar_select %p933_p8, 1, 0 }
  0x14   : > { %s1132_s26 = scalar_select %p937_p9, 1, 0 }
  0x15   : > { %s942_s27 = scalar_select %p49_p7, %s842_s16, %s51_s22  }
  0x16   : > { %p944_p11 = por %p124_p10, %p64_p3  ;;  %s951_s29 = sand.u32 1, %s842_s16  }
  0x17   : > { %s596_s30 = sshll.u32 %s951_s29, 3  ;;  %s597_s4 = sshll.u32 %s850_s18, 7 }
  0x18   : > { %s1133_s28 = scalar_select %p944_p11, 1, 0 }
  0x19   : > { %s960_s7 = scalar_lea.hbm %s1125_s1, %s597_s4  ;;  %s148_s8 = scalar_lea.vmem [#allocation7], %s596_s30 }
  0x1a   : > { %s156_s9 = sshll.u32 %s148_s8, 4  ;;  %p968_p0 = pnand %p646_p13, %p927_p4  ;;  %s964_s9 = int_to_ptr.vmem [resolvable:$true] %s156_s9 }
  0x1b   : > { %s145_s11 = scalar_lea.sflag [#allocation8], %s951_s29  ;;  %s708_s12 = scalar_lea.hbm %s960_s7, 128 }
  0x1c   : > { %p709_p3 = scmp.ne.s32.totalorder %s960_s7, %s708_s12  ;;  %p710_p5 = pneg %p968_p0 }
  0x1d   : > { %s713_s20 = scalar_lea.hbm %s1125_s1, 256  ;;  %p714_p4 = scmp.lt.u32.totalorder %s960_s7, %s1125_s1 }
  0x1e   : > { %p711_p6 = pnand %p710_p5, %p709_p3  ;;  %p715_p10 = scmp.lt.u32.totalorder %s713_s20, %s708_s12 }
  0x1f   : > { %p717_p12 = scmp.lt.u32.totalorder %s708_s12, %s960_s7 }
  0x20   : > { %p712_p7 = pneg %p711_p6  ;;  %p716_p13 = por %p715_p10, %p714_p4 }
  0x22   : > { %p718_p1 = por %p717_p12, %p716_p13 }
  0x24   : > { %p719_p2 = pnand %p718_p1, %p712_p7 }
  0x26   : > { %722 = shalt.err (!%p719_p2)
}
  0x27   : > { %s723_s24 = scalar_lea.vmem %s964_s9, 128  ;;  %s856_s5 = smov [#allocation7]  }
  0x28   : > { %p724_p3 = scmp.ne.s32.totalorder %s964_s9, %s723_s24  ;;  %s728_s6 = sshll.u32 %s856_s5, 4  ;;  %s729_s6 = int_to_ptr.vmem [resolvable:$false] %s728_s6 }
  0x29   : > { %s730_s8 = scalar_lea.vmem %s729_s6, 256  ;;  %p731_p9 = scmp.lt.s32.totalorder %s964_s9, %s729_s6 }
  0x2a   : > { %p726_p6 = pnand %p724_p3, %p710_p5  ;;  %p732_p4 = scmp.lt.s32.totalorder %s730_s8, %s723_s24 }
  0x2c   : > { %p727_p11 = pneg %p726_p6  ;;  %p733_p10 = por %p732_p4, %p731_p9 }
  0x2e   : > { %p734_p12 = pnand %p733_p10, %p727_p11 }
  0x30   : > { %737 = shalt.err (!%p734_p12)
}
  0x31   : > { %638 = dma.hbm_to_vmem [thread:$0]  (!%p968_p0), %s960_s7, 128, %s964_s9, %s145_s11  }
  0x32   : > { %p1135_p1 = scmp.lt.s32.totalorder %s854_s19, 3  ;;  %p1136_p2 = scmp.ge.s32.totalorder %s854_s19, 1 }
  0x33   : > { %s1013_s20 = scalar_lea.hbm %s1126_s2, %s597_s4  ;;  %s167_s22 = scalar_lea.vmem [#allocation10], %s596_s30 }
  0x34   : > { %p1004_p7 = pnand %p1136_p2, %p1135_p1  ;;  %s175_s23 = sshll.u32 %s167_s22, 4  ;;  %s176_s23 = int_to_ptr.vmem [resolvable:$true] %s175_s23 }
  0x35   : > { %s164_s7 = scalar_lea.sflag [#allocation11], %s951_s29  ;;  %s738_s9 = scalar_lea.hbm %s1013_s20, 128 }
  0x36   : > { %s1137_s12 = scalar_select %p1004_p7, 1, 0 }
  0x37   : > { %p739_p9 = scmp.ne.s32.totalorder %s1013_s20, %s738_s9  ;;  %s743_s4 = scalar_lea.hbm %s1126_s2, 256 }
  0x38   : > { %p744_p3 = scmp.lt.u32.totalorder %s1013_s20, %s1126_s2  ;;  %p745_p6 = scmp.lt.u32.totalorder %s743_s4, %s738_s9 }
  0x39   : > { %p741_p11 = pnand %p739_p9, %p710_p5  ;;  %p747_p10 = scmp.lt.u32.totalorder %s738_s9, %s1013_s20 }
  0x3a   : > { %p746_p4 = por %p745_p6, %p744_p3 }
  0x3b   : > { %p742_p13 = pneg %p741_p11 }
  0x3c   : > { %p748_p12 = por %p747_p10, %p746_p4 }
  0x3e   : > { %p749_p1 = pnand %p748_p12, %p742_p13 }
  0x40   : > { %752 = shalt.err (!%p749_p1)
}
  0x41   : > { %s753_s29 = scalar_lea.vmem %s176_s23, 128  ;;  %s857_s30 = smov [#allocation10]  }
  0x42   : > { %p754_p2 = scmp.ne.s32.totalorder %s176_s23, %s753_s29  ;;  %s758_s8 = sshll.u32 %s857_s30, 4  ;;  %s759_s8 = int_to_ptr.vmem [resolvable:$false] %s758_s8 }
  0x43   : > { %s760_s13 = scalar_lea.vmem %s759_s8, 256  ;;  %p761_p8 = scmp.lt.s32.totalorder %s176_s23, %s759_s8 }
  0x44   : > { %p756_p9 = pnand %p754_p2, %p710_p5  ;;  %p762_p7 = scmp.lt.s32.totalorder %s760_s13, %s753_s29 }
  0x46   : > { %p757_p11 = pneg %p756_p9  ;;  %p763_p3 = por %p762_p7, %p761_p8 }
  0x48   : > { %p764_p6 = pnand %p763_p3, %p757_p11 }
  0x4a   : > { %767 = shalt.err (!%p764_p6)
}
  0x4b   : > { %641 = dma.hbm_to_vmem [thread:$0]  (!%p968_p0), %s1013_s20, 128, %s176_s23, %s164_s7  }
  0x4c   : > { %p1138_p13 = scmp.ne.s32.totalorder %s1137_s12, 0 }
  0x4d   : > { %s1040_s0 = sand.u32 (!%p1138_p13), 1, %s838_s15   ;;  %p1139_p8 = scmp.ne.s32.totalorder (!%p1138_p13), %s1131_s25, 0 }
  0x4e   : > { %184 = sbr.rel (%p1138_p13) target bundleno = 902 (0x386), region = 28  ;;  %s1043_s22 = sshll.u32 (!%p1138_p13), %s1040_s0, 3 }
  0x4f   : > { %s187_s9 = scalar_lea.sflag (!%p1138_p13), [#allocation8], %s1040_s0  ;;  %s190_s11 = scalar_lea.vmem (!%p1138_p13), [#allocation7], %s1043_s22 }
  0x55   : > { %821 = dma.done.wait (%p1139_p8), %s187_s9, 128  }
  0x56   : > { %823 = vsyncadd (%p1139_p8), %s187_s9, 4294967168  ;;  %s196_s10 = scalar_lea.sflag [#allocation11], %s1040_s0  ;;  %s199_s12 = scalar_lea.vmem [#allocation10], %s1043_s22 }
  0x57   : > { %825 = dma.done.wait (%p1139_p8), %s196_s10, 128  }
  0x58   : > { %827 = vsyncadd (%p1139_p8), %s196_s10, 4294967168  ;;  %vm232_vm0 = vcmask 130048   ;;  %v858_v0 = vmov 0.0   ;;  %vm859_vm1 = vmmov 0   ;;  %v234_v1 = vld [vmem:[%s199_s12] sm:$0xff]  ;;  %v235_v2 = vld [vmem:[%s190_s11] sm:$0xff]  ;;  %v340_v13 = vlaneseq }
  0x59   : > { %619 = vmatprep.subr.mxu0 %v858_v0  ;;  %233 = vst.msk [vmem:[#allocation4] sm:$0xff] %vm232_vm0, %v858_v0  ;;  %621 = vmatprep.mubr.msk.f32.mxu0 %vm859_vm1, %v858_v0  ;;  %v236_v3 = vmul.f32 4.0, %v235_v2  ;;  %vm229_vm2 = vcmask 7168   ;;  %v860_v4 = vmov -inf   ;;  %vm315_vm3 = vcmask 64512   ;;  %s350_s25 = sld [smem:[#allocation6]] }
  0x5a   : > { %624 = vmatprep.subr.mxu1 %v858_v0  ;;  %626 = vmatprep.mubr.msk.f32.mxu1 %vm859_vm1, %v858_v0  ;;  %230 = vst.msk [vmem:[#allocation2] sm:$0xff] %vm229_vm2, %v860_v4  ;;  %231 = vst.msk [vmem:[#allocation3] sm:$0xff] %vm229_vm2, %v858_v0  ;;  %v861_v8 = vmov 0   ;;  %v341_v14 = vshrl.u32 %v340_v13, 7  ;;  %v346_v15 = vand.u32 127, %v340_v13  ;;  %s612_s7 = sshll.u32 %s846_s17, 7 }
  0x5b   : > { %620 = vmatpush3.xpose.msk.msra.mxu0 %vm232_vm0, %v234_v1  ;;  %625 = vmatpush3.msra.mxu1 %v234_v1  ;;  %s351_s20 = smul.u32 668265295, %s846_s17  ;;  %s224_s24 = scalar_lea.vmem [#allocation12], %s1043_s22 }
  0x5c   : > { %700 = vset.pattern.permute.xlu0 %v861_v8  ;;  %701 = vset.pattern.permute.xlu1 %v861_v8  ;;  %v353_v16 = vmul.u32 2654435761, %v341_v14  ;;  %v354_v17 = vmul.u32 2246822519, %v346_v15  ;;  %s485_s4 = sshll.u32 %s224_s24, 4  ;;  %s1074_s29 = scalar_lea.hbm %s1127_s3, %s612_s7  ;;  %s1076_s4 = int_to_ptr.vmem [resolvable:$true] %s485_s4 }
  0x5d   : > { %s471_s30 = scalar_lea.sflag [#allocation9], %s1040_s0  ;;  %s768_s8 = scalar_lea.vmem %s1076_s4, 128 }
  0x5e   : > { %622 = vmatmul.mubr.msk.f32.vlgmr.msra.gmra.mrb[0].mxu0 %vm232_vm0, %v236_v3  ;;  %v355_v18 = vxor.u32 %v354_v17, %v353_v16  ;;  %p769_p0 = scmp.ne.s32.totalorder %s1076_s4, %s768_s8  ;;  %p1140_p5 = scmp.ne.s32.totalorder %s1132_s26, 0 }
  0x5f   : > { %s352_s23 = sadd.s32 %s351_s20, %s350_s25  ;;  %s862_s17 = smov [#allocation12]  }
  0x60   : > { %v356_v19 = vstv %s352_s23  ;;  %v375_v45 = vld [vmem:[#allocation4] sm:$0xff]  ;;  %p770_p7 = pnand %p769_p0, %p1140_p5  ;;  %s772_s13 = sshll.u32 %s862_s17, 4  ;;  %s773_s13 = int_to_ptr.vmem [resolvable:$false] %s772_s13 }
  0x61   : > { %v314_v9 = vld [vmem:[#allocation2] sm:$0xff]  ;;  %v357_v20 = vxor.u32 %v356_v19, %v355_v18  ;;  %v331_v40 = vld [vmem:[#allocation3] sm:$0xff]  ;;  %s774_s22 = scalar_lea.vmem %s773_s13, 256  ;;  %p775_p10 = scmp.lt.s32.totalorder %s1076_s4, %s773_s13 }
  0x62   : > { %p771_p4 = pneg %p770_p7  ;;  %p776_p12 = scmp.lt.s32.totalorder %s774_s22, %s768_s8 }
  0x63   : > { %v606_v21 = vshrl.u32 %v357_v20, 16 }
  0x64   : > { %p777_p1 = por %p776_p12, %p775_p10 }
  0x65   : > { %v360_v22 = vxor.u32 %v606_v21, %v357_v20 }
  0x66   : > { %p778_p2 = pnand %p777_p1, %p771_p4 }
  0x67   : > { %v361_v23 = vmul.u32 2246822507, %v360_v22 }
  0x69   : > { %v607_v24 = vshrl.u32 %v361_v23, 13 }
  0x6b   : > { %v364_v25 = vxor.u32 %v607_v24, %v361_v23 }
  0x6d   : > { %v365_v26 = vmul.u32 3266489909, %v364_v25 }
  0x6f   : > { %v608_v27 = vshrl.u32 %v365_v26, 16 }
  0x71   : > { %v368_v28 = vxor.u32 %v608_v27, %v365_v26 }
  0x73   : > { %v369_v31 = vand.u32 2147483647, %v368_v28 }
  0x75   : > { %vm370_vm4 = vcmp.ge.s32.totalorder %v369_v31, 214748364 }
  0x76   : > { %v609_v33 = vsel %vm370_vm4, 1.0, %v858_v0 }
  0x77   : > { %v373_v34 = vmul.f32 1.1111112, %v609_v33 }
 0x131   : > { %v310_v5 = vpop.f32.mrb[0].mxu0 }
 0x132   : > { %v623_v6 = vpop.f32.mrb[1].mxu0  ;;  %v316_v7 = vsel %vm315_vm3, %v310_v5, -inf }
 0x133   : > { %317 = vmax.xlane.f32.xlu0 %v316_v7 }
 0x1c0   : > { %v318_v10 = vpop.xlane.xlu0 %317 }
 0x1c1   : > { %v319_v11 = vmax.f32 %v314_v9, %v318_v10 }
 0x1c3   : > { %v320_v12 = vsub.f32 %v314_v9, %v319_v11  ;;  %339 = vst.msk [vmem:[#allocation2] sm:$0xff] %vm229_vm2, %v319_v11  ;;  %325 = vperm.xlu0 %700, %v319_v11  }
 0x1c5   : > { %v321_v38 = vmul.f32 1.442695, %v320_v12 }
 0x242   : > { %v326_v29 = vpop.permute.xlu0 %325 }
 0x243   : > { %v328_v30 = vsub.f32 %v310_v5, %v326_v29 }
 0x245   : > { %v329_v32 = vmul.f32 1.442695, %v328_v30 }
 0x247   : > { %702 = vpow2.f32 %v329_v32 }
 0x248   : > { %704 = vpow2.f32 %v321_v38 }
 0x251   : > { %v703_v35 = vpop.eup %702 }
 0x252   : > { %v333_v36 = vsel %vm315_vm3, %v703_v35, 0.0  ;;  %v374_v37 = vmul.f32 %v703_v35, %v373_v34  ;;  %v705_v39 = vpop.eup %704 }
 0x253   : > { %334 = vadd.xlane.f32.xlu1 %v333_v36  ;;  %v332_v41 = vmul.f32 %v705_v39, %v331_v40 }
 0x254   : > { %627 = vmatmul.mubr.msk.f32.vlgmr.msra.gmra.mrb[0].mxu1 %vm315_vm3, %v374_v37 }
 0x264   : > { %378 = vperm.xlu1 %701, %v705_v39  }
 0x2e0   : > { %v335_v42 = vpop.xlane.xlu1 %334 }
 0x2e1   : > { %v336_v43 = vadd.f32 %v335_v42, %v332_v41 }
 0x2e3   : > { %338 = vst.msk [vmem:[#allocation3] sm:$0xff] %vm229_vm2, %v336_v43 }
 0x2e4   : > { %v379_v46 = vpop.permute.xlu1 %378 }
 0x2e5   : > { %v381_v47 = vmul.f32 %v379_v46, %v375_v45 }
 0x2ea   : > { %v461_v44 = vld [vmem:[#allocation3] sm:$0xff] }
 0x2eb   : > { %464 = vperm.xlu1 %701, %v461_v44  }
 0x327   : > { %v451_v48 = vpop.f32.mrb[0].mxu1 }
 0x328   : > { %v455_v49 = vadd.f32 %v451_v48, %v381_v47  ;;  %v628_v50 = vpop.f32.mrb[1].mxu1 }
 0x32a   : > { %456 = vst.msk [vmem:[#allocation4] sm:$0xff] %vm232_vm0, %v455_v49 }
 0x331   : > { %v460_v53 = vld [vmem:[#allocation4] sm:$0xff] }
 0x36a   : > { %v465_v51 = vpop.permute.xlu1 %464 }
 0x36b   : > { %706 = vrcp.f32 %v465_v51 }
 0x375   : > { %v707_v52 = vpop.eup %706 }
 0x376   : > { %v468_v54 = vmul.f32 %v707_v52, %v460_v53 }
 0x378   : > { %469 = vst.msk [vmem:[%s224_s24] sm:$0xff] %vm232_vm0, %v468_v54 }
 0x379   : > { %781 = shalt.err (!%p778_p2)
}
 0x37a   : > { %s782_s0 = scalar_lea.hbm %s1074_s29, 128  ;;  %s786_s10 = scalar_lea.hbm %s1127_s3, 256 }
 0x37b   : > { %p783_p9 = scmp.ne.s32.totalorder %s1074_s29, %s782_s0  ;;  %p787_p6 = scmp.lt.u32.totalorder %s1074_s29, %s1127_s3 }
 0x37c   : > { %p788_p13 = scmp.lt.u32.totalorder %s786_s10, %s782_s0  ;;  %p790_p0 = scmp.lt.u32.totalorder %s782_s0, %s1074_s29 }
 0x37d   : > { %p784_p11 = pnand %p783_p9, %p1140_p5 }
 0x37e   : > { %p789_p8 = por %p788_p13, %p787_p6 }
 0x37f   : > { %p785_p3 = pneg %p784_p11 }
 0x380   : > { %p791_p7 = por %p790_p0, %p789_p8 }
 0x382   : > { %p792_p4 = pnand %p791_p7, %p785_p3 }
 0x384   : > { %795 = shalt.err (!%p792_p4)
}
 0x385   : > { %633 = dma.vmem_to_hbm [thread:$0]  (%p1140_p5), %s1076_s4, 128, %s1074_s29, %s471_s30  }
 0x386 PF: > { %s497_s20 = sand.u32 1, %s834_s14   ;;  %p1141_p10 = scmp.ne.s32.totalorder %s1133_s28, 0 }
 0x387   : > { %p1142_p12 = scmp.ge.s32.totalorder %s854_s19, 2  ;;  %s498_s23 = scalar_lea.sflag [#allocation9], %s497_s20 }
 0x389   : > { %p643_p1 = pnand %p1142_p12, %p1141_p10 }
 0x38b   : > { %829 = dma.done.wait (!%p643_p1), %s498_s23, 128  }
 0x38c   : > { %831 = vsyncadd (!%p643_p1), %s498_s23, 4294967168  ;;  %s23_s19 = sadd.s32 1, %s854_s19   ;;  %s1143_s14 = smov %s838_s15 }
 0x38d   : > { %p20_p2 = scmp.ge.s32.totalorder %s23_s19, 4   ;;  %s1144_s15 = smov %s842_s16 }
 0x38e   : > { %s1145_s16 = smov %s942_s27  ;;  %s1146_s17 = smov %s850_s18 }
 0x38f   : > { %s1147_s18 = smov %s1149_s21  ;;  %22 = sbr.rel (!%p20_p2) target bundleno = 10 (0xa), region = 94 }
 0x396   :  { %503 = vsyncpa [#allocation8], 1 }
 0x397   :  { %505 = vsyncpa [#allocation8 + $0x1], 1 }
 0x398   :  { %506 = vsyncpa [#allocation11], 1 }
 0x399   :  { %508 = vsyncpa [#allocation11 + $0x1], 1 }
 0x39a   :  { %509 = vsyncpa [#allocation9], 1 }
 0x39b   :  { %511 = vsyncpa [#allocation9 + $0x1], 1 }

</bundles_post_ra>
